<compile_context>
chip_gen: v7x
topology: tpu7x:2x2x1
jax: 0.10.0
libtpu: 0.0.40
codegen_flags: <defaults>
</compile_context>

<pallas_src>
import jax
import jax.numpy as jnp
from jax.experimental import pallas as pl
from jax.experimental.pallas import tpu as pltpu


def _round_up(x, m):
    return ((x + m - 1) // m) * m


def _chip_hints():
    """Best-effort chip introspection.

    Returns (tensorcores_per_device, vmem_tile_budget_bytes, vmem_limit_cap_bytes).
    Falls back to conservative single-core defaults if introspection fails.
    """
    kind = ""
    try:
        kind = jax.devices()[0].device_kind.lower()
    except Exception:
        pass
    if "v7" in kind:
        # 2 TensorCores / device, 64 MiB physical VMEM -> tighter budget.
        return 2, 24 * 1024 * 1024, 48 * 1024 * 1024
    if "v4" in kind or "v5p" in kind:
        # Megacore chips: 2 TCs, 128 MiB VMEM.
        return 2, 48 * 1024 * 1024, 100 * 1024 * 1024
    # v5e / v6e: 1 TensorCore, 128 MiB VMEM.
    return 1, 48 * 1024 * 1024, 100 * 1024 * 1024


def _mlp_kernel(x_ref, w1_ref, b1_ref, w2_ref, b2_ref, w3_ref, b3_ref, o_ref):
    # x tile arrives batch-major straight from HBM: (bm, in_dim).
    x = x_ref[...]

    # fc1 + ReLU: contract in_dim of w1 (128, in_dim) with in_dim of x (bm, in_dim)
    # -> (128, bm) feature-major (batch on LANES), f32 MXU accumulate.  The
    # transposed-RHS contraction happens in VMEM; no HBM transpose needed.
    h1 = jax.lax.dot_general(
        w1_ref[...], x,
        dimension_numbers=(((1,), (1,)), ((), ())),
        preferred_element_type=jnp.float32)                              # (128, bm)
    h1 = jnp.maximum(h1 + b1_ref[...], 0.0)

    # fc2 + ReLU (MXU, f32 accumulate).
    h2 = jnp.dot(w2_ref[...], h1, preferred_element_type=jnp.float32)    # (64, bm)
    h2 = jnp.maximum(h2 + b2_ref[...], 0.0)

    # fc3 (64 -> 1): VPU multiply + sublane reduction; result is a lane-dense
    # (1, bm) row, no 1-wide MXU pass.
    logits = jnp.sum(h2 * w3_ref[...], axis=0, keepdims=True) + b3_ref[...]  # (1, bm)

    # sigmoid epilogue (EUP) + dense lane-row store.
    o_ref[...] = jax.nn.sigmoid(logits).astype(o_ref.dtype)


def simple_nn_forward(x, params, *, bm=None):
    """x: (B, input_dim) f32.

    params (PyTorch-style layout):
      w1: (128, input_dim)  b1: (128, 1)
      w2: (64, 128)         b2: (64, 1)
      w3: (64, 1)  (= fc3.weight.T)   b3: (1, 1)
    Returns (B, 1) f32.
    """
    B, in_dim = x.shape
    w1, b1 = params["w1"], params["b1"]
    w2, b2 = params["w2"], params["b2"]
    w3, b3 = params["w3"], params["b3"]

    n_tc, vmem_budget, vmem_cap = _chip_hints()

    # ---- Pick the batch tile (bm_eff) from a VMEM budget ------------------
    # Bytes resident in VMEM per batch column (lane-padded layouts):
    #   x tile (double-buffered) + h1(128) + h2(64) + logits(8 sublane-padded)
    #   + output tile (double-buffered).
    in_dim_pad = _round_up(in_dim, 128)
    per_col = 4 * (2 * in_dim_pad + 128 + 64 + 8 + 2 * 8)
    bm_cap = max(128, (vmem_budget // per_col) // 128 * 128)

    bm_eff = 8192 if bm is None else bm
    bm_eff = max(128, (min(bm_eff, bm_cap) // 128) * 128)
    bm_eff = min(bm_eff, _round_up(B, 128))

    # Multi-TensorCore chips (v7x): make the "parallel" step count a multiple
    # of the core count so both cores get balanced work.  Single-TC chips
    # (v5e/v6e) keep the fewest possible steps (no artificial split).
    if n_tc > 1 and _round_up(B, 128) >= n_tc * 128:
        steps = pl.cdiv(_round_up(B, 128), bm_eff)
        steps = _round_up(max(steps, n_tc), n_tc)
        bm_eff = max(128, _round_up(pl.cdiv(B, steps), 128))

    B_pad = _round_up(B, bm_eff)
    grid = (B_pad // bm_eff,)

    # Only materialize a padded copy when actually needed (zero rows stay
    # finite through ReLU/sigmoid so padded columns are harmless).
    x_in = x if B_pad == B else jnp.pad(x, ((0, B_pad - B), (0, 0)))

    # Explicit scoped-VMEM limit so the big tile never trips the default
    # (16 MiB on v5e); re-budgeted for v7x's 64 MiB physical VMEM.
    weights_bytes = 4 * (128 * in_dim_pad + 128 * 128 + 64 * 128
                         + 64 * 128 + 64 * 128 + 8 * 128)
    vmem_need = per_col * bm_eff + 2 * weights_bytes
    vmem_limit = int(min(vmem_cap, max(32 * 1024 * 1024, 2 * vmem_need)))

    # Advisory cost hint for XLA's scheduler.
    flops = 2 * B_pad * (in_dim * 128 + 128 * 64 + 64)
    bytes_accessed = 4 * (in_dim * B_pad + B_pad
                          + w1.size + b1.size + w2.size + b2.size + w3.size + b3.size)
    cost = pl.CostEstimate(flops=flops, transcendentals=B_pad,
                           bytes_accessed=bytes_accessed)

    # Small weights/biases (~50 KB total) are loaded whole into VMEM.
    full = lambda a: pl.BlockSpec(a.shape, lambda i: (0,) * a.ndim)

    out = pl.pallas_call(
        _mlp_kernel,
        out_shape=jax.ShapeDtypeStruct((1, B_pad), x.dtype),
        grid_spec=pltpu.PrefetchScalarGridSpec(
            num_scalar_prefetch=0,
            grid=grid,
            in_specs=[
                pl.BlockSpec((bm_eff, in_dim), lambda i: (i, 0)),        # x tile (batch-major)
                full(w1), full(b1),
                full(w2), full(b2),
                full(w3), full(b3),
            ],
            out_specs=pl.BlockSpec((1, bm_eff), lambda i: (0, i)),       # lane-dense row
        ),
        compiler_params=pltpu.CompilerParams(
            dimension_semantics=("parallel",),
            vmem_limit_bytes=vmem_limit,
        ),
        cost_estimate=cost,
    )(x_in, w1, b1, w2, b2, w3, b3)

    # Layout plumbing only: back to the module's (B, 1) shape.
    return out[0, :B].reshape(B, 1)


def init_params(key, input_dim):
    """Deterministic init mirroring nn.Linear (weights kept in PyTorch
    (out_features, in_features) layout; biases as (out, 1) columns; fc3 weight
    stored as a (64, 1) column)."""
    k1, k2, k3, k4, k5, k6 = jax.random.split(key, 6)

    def linear(kw, kb, fan_in, fan_out):
        bound = 1.0 / jnp.sqrt(fan_in)
        w = jax.random.uniform(kw, (fan_out, fan_in), jnp.float32, -bound, bound)
        b = jax.random.uniform(kb, (fan_out, 1), jnp.float32, -bound, bound)
        return w, b

    w1, b1 = linear(k1, k2, input_dim, 128)
    w2, b2 = linear(k3, k4, 128, 64)
    w3r, b3 = linear(k5, k6, 64, 1)          # w3r: (1, 64), b3: (1, 1)
    return {"w1": w1, "b1": b1, "w2": w2, "b2": b2,
            "w3": w3r.T, "b3": b3.reshape(1, 1)}


if __name__ == "__main__":
    key = jax.random.PRNGKey(0)
    kx, kp = jax.random.split(key)

    batch, input_dim = 8, 32
    x = jax.random.normal(kx, (batch, input_dim), jnp.float32)
    params = init_params(kp, input_dim)

    out = simple_nn_forward(x, params)
    jax.block_until_ready(out)

    # Pure-JAX reference (same math, f32-accurate matmuls).
    hp = jax.lax.Precision.HIGHEST
    h1 = jnp.maximum(jnp.dot(x, params["w1"].T, precision=hp) + params["b1"].T, 0.0)
    h2 = jnp.maximum(jnp.dot(h1, params["w2"].T, precision=hp) + params["b2"].T, 0.0)
    ref = jax.nn.sigmoid(jnp.dot(h2, params["w3"], precision=hp) + params["b3"])

    assert out.shape == (batch, 1)
    assert jnp.allclose(out, ref, atol=2e-5, rtol=2e-5)

    print("KERNEL_OK")
</pallas_src>

<mosaic_0001>
module attributes {stable_mosaic.version = 11 : i64} {
  func.func @_mlp_kernel(%arg0: i32, %arg1: memref<128x32xf32, #tpu.memory_space<vmem>>, %arg2: memref<128x32xf32, #tpu.memory_space<vmem>>, %arg3: memref<128x1xf32, #tpu.memory_space<vmem>>, %arg4: memref<64x128xf32, #tpu.memory_space<vmem>>, %arg5: memref<64x1xf32, #tpu.memory_space<vmem>>, %arg6: memref<64x1xf32, #tpu.memory_space<vmem>>, %arg7: memref<1x1xf32, #tpu.memory_space<vmem>>, %arg8: memref<1x128xf32, #tpu.memory_space<vmem>>) attributes {dimension_semantics = [#tpu.dimension_semantics<parallel>], iteration_bounds = array<i64: 1>, scalar_prefetch = 0 : i64, scratch_operands = 0 : i64, tpu.core_type = #tpu.core_type<tc>, window_params = [{transform_indices = @transform_0, window_bounds = array<i64: 128, 32>}, {pipeline_mode = #tpu.pipeline_mode<synchronous>, transform_indices = @transform_1, window_bounds = array<i64: 128, 32>}, {pipeline_mode = #tpu.pipeline_mode<synchronous>, transform_indices = @transform_2, window_bounds = array<i64: 128, 1>}, {pipeline_mode = #tpu.pipeline_mode<synchronous>, transform_indices = @transform_3, window_bounds = array<i64: 64, 128>}, {pipeline_mode = #tpu.pipeline_mode<synchronous>, transform_indices = @transform_4, window_bounds = array<i64: 64, 1>}, {pipeline_mode = #tpu.pipeline_mode<synchronous>, transform_indices = @transform_5, window_bounds = array<i64: 64, 1>}, {pipeline_mode = #tpu.pipeline_mode<synchronous>, transform_indices = @transform_6, window_bounds = array<i64: 1, 1>}, {transform_indices = @transform_7, window_bounds = array<i64: 1, 128>}]} {
    %c0 = arith.constant 0 : index
    %c0_0 = arith.constant 0 : index
    %0 = vector.load %arg1[%c0, %c0_0] : memref<128x32xf32, #tpu.memory_space<vmem>>, vector<128x32xf32>
    %c0_1 = arith.constant 0 : index
    %c0_2 = arith.constant 0 : index
    %1 = vector.load %arg2[%c0_1, %c0_2] : memref<128x32xf32, #tpu.memory_space<vmem>>, vector<128x32xf32>
    %cst = arith.constant dense<0.000000e+00> : vector<128x128xf32>
    %2 = tpu.matmul %1, %0, %cst {dimension_numbers = #tpu.dot_dimension_numbers<[1], [1], [0], [0], [0, 0, 1, 0], [], []>} : vector<128x32xf32>, vector<128x32xf32>, vector<128x128xf32> -> vector<128x128xf32>
    %c0_3 = arith.constant 0 : index
    %c0_4 = arith.constant 0 : index
    %3 = vector.load %arg3[%c0_3, %c0_4] : memref<128x1xf32, #tpu.memory_space<vmem>>, vector<128x1xf32>
    %4 = vector.broadcast %3 : vector<128x1xf32> to vector<128x128xf32>
    %5 = arith.addf %2, %4 : vector<128x128xf32>
    %cst_5 = arith.constant 0.000000e+00 : f32
    %6 = vector.broadcast %cst_5 : f32 to vector<128x128xf32>
    %7 = arith.maximumf %5, %6 : vector<128x128xf32>
    %c0_6 = arith.constant 0 : index
    %c0_7 = arith.constant 0 : index
    %8 = vector.load %arg4[%c0_6, %c0_7] : memref<64x128xf32, #tpu.memory_space<vmem>>, vector<64x128xf32>
    %cst_8 = arith.constant dense<0.000000e+00> : vector<64x128xf32>
    %9 = tpu.matmul %8, %7, %cst_8 {dimension_numbers = #tpu.dot_dimension_numbers<[1], [0], [0], [1], [0, 0, 1, 1], [], []>} : vector<64x128xf32>, vector<128x128xf32>, vector<64x128xf32> -> vector<64x128xf32>
    %c0_9 = arith.constant 0 : index
    %c0_10 = arith.constant 0 : index
    %10 = vector.load %arg5[%c0_9, %c0_10] : memref<64x1xf32, #tpu.memory_space<vmem>>, vector<64x1xf32>
    %11 = vector.broadcast %10 : vector<64x1xf32> to vector<64x128xf32>
    %12 = arith.addf %9, %11 : vector<64x128xf32>
    %cst_11 = arith.constant 0.000000e+00 : f32
    %13 = vector.broadcast %cst_11 : f32 to vector<64x128xf32>
    %14 = arith.maximumf %12, %13 : vector<64x128xf32>
    %c0_12 = arith.constant 0 : index
    %c0_13 = arith.constant 0 : index
    %15 = vector.load %arg6[%c0_12, %c0_13] : memref<64x1xf32, #tpu.memory_space<vmem>>, vector<64x1xf32>
    %16 = vector.broadcast %15 : vector<64x1xf32> to vector<64x128xf32>
    %17 = arith.mulf %14, %16 : vector<64x128xf32>
    %cst_14 = arith.constant dense<0.000000e+00> : vector<128xf32>
    %18 = vector.multi_reduction <add>, %17, %cst_14 [0] : vector<64x128xf32> to vector<128xf32>
    %19 = vector.shape_cast %18 : vector<128xf32> to vector<1x128xf32>
    %c0_15 = arith.constant 0 : index
    %c0_16 = arith.constant 0 : index
    %20 = vector.load %arg7[%c0_15, %c0_16] : memref<1x1xf32, #tpu.memory_space<vmem>>, vector<1x1xf32>
    %21 = vector.broadcast %20 : vector<1x1xf32> to vector<1x128xf32>
    %22 = arith.addf %19, %21 : vector<1x128xf32>
    %23 = arith.negf %22 : vector<1x128xf32>
    %24 = math.exp %23 : vector<1x128xf32>
    %cst_17 = arith.constant 1.000000e+00 : f32
    %25 = vector.broadcast %cst_17 : f32 to vector<1x128xf32>
    %26 = arith.addf %25, %24 : vector<1x128xf32>
    %27 = arith.divf %25, %26 : vector<1x128xf32>
    %c0_18 = arith.constant 0 : index
    %c0_19 = arith.constant 0 : index
    %28 = vector.load %arg8[%c0_18, %c0_19] : memref<1x128xf32, #tpu.memory_space<vmem>>, vector<1x128xf32>
    tpu.vector_store %arg8[%c0_18, %c0_19], %27 {strides = array<i32>} : memref<1x128xf32, #tpu.memory_space<vmem>>, vector<1x128xf32>,
    return
  }
  func.func @transform_0(%arg0: i32) -> (i32, i32) {
    %c0_i32 = arith.constant 0 : i32
    %c0_i32_0 = arith.constant 0 : i32
    return %arg0, %c0_i32 : i32, i32
  }
  func.func @transform_1(%arg0: i32) -> (i32, i32) {
    %c0_i32 = arith.constant 0 : i32
    %c0_i32_0 = arith.constant 0 : i32
    %c0_i32_1 = arith.constant 0 : i32
    return %c0_i32, %c0_i32_0 : i32, i32
  }
  func.func @transform_2(%arg0: i32) -> (i32, i32) {
    %c0_i32 = arith.constant 0 : i32
    %c0_i32_0 = arith.constant 0 : i32
    %c0_i32_1 = arith.constant 0 : i32
    return %c0_i32, %c0_i32_0 : i32, i32
  }
  func.func @transform_3(%arg0: i32) -> (i32, i32) {
    %c0_i32 = arith.constant 0 : i32
    %c0_i32_0 = arith.constant 0 : i32
    %c0_i32_1 = arith.constant 0 : i32
    return %c0_i32, %c0_i32_0 : i32, i32
  }
  func.func @transform_4(%arg0: i32) -> (i32, i32) {
    %c0_i32 = arith.constant 0 : i32
    %c0_i32_0 = arith.constant 0 : i32
    %c0_i32_1 = arith.constant 0 : i32
    return %c0_i32, %c0_i32_0 : i32, i32
  }
  func.func @transform_5(%arg0: i32) -> (i32, i32) {
    %c0_i32 = arith.constant 0 : i32
    %c0_i32_0 = arith.constant 0 : i32
    %c0_i32_1 = arith.constant 0 : i32
    return %c0_i32, %c0_i32_0 : i32, i32
  }
  func.func @transform_6(%arg0: i32) -> (i32, i32) {
    %c0_i32 = arith.constant 0 : i32
    %c0_i32_0 = arith.constant 0 : i32
    %c0_i32_1 = arith.constant 0 : i32
    return %c0_i32, %c0_i32_0 : i32, i32
  }
  func.func @transform_7(%arg0: i32) -> (i32, i32) {
    %c0_i32 = arith.constant 0 : i32
    %c0_i32_0 = arith.constant 0 : i32
    return %c0_i32, %arg0 : i32, i32
  }
}

</mosaic_0001>

<bundles_post_ra>
// kernel: tpu_custom_call.1
= control target key start
LH: loop header
LB: loop body
LE: loop exit
PB: predicated region body
PF: predicated region fallthrough
CT: control target
= control target key end

     0   :  { %s1313_s0 = inlined_call_operand.vmem [shape: f32[128,32], index: 0, kind: input, shape index: {}]   ;;  %s1314_s1 = inlined_call_operand.vmem [shape: f32[128,32], index: 1, kind: input, shape index: {}]   ;;  %s1315_s2 = inlined_call_operand.vmem [shape: f32[128,1], index: 2, kind: input, shape index: {}]   ;;  %s1316_s3 = inlined_call_operand.vmem [shape: f32[64,128], index: 3, kind: input, shape index: {}]   ;;  %s1317_s4 = inlined_call_operand.vmem [shape: f32[64,1], index: 4, kind: input, shape index: {}]   ;;  %s1318_s5 = inlined_call_operand.vmem [shape: f32[64,1], index: 5, kind: input, shape index: {}]   ;;  %s1319_s6 = inlined_call_operand.<no memory space> [shape: f32[1,1], index: 6, kind: input, shape index: {}]   ;;  %s1320_s7 = inlined_call_operand.hbm [shape: f32[1,128], index: 7, kind: output, shape index: {}]  }
   0x1   :  { %v12_v0 = vstv %s1319_s6 }
   0x2   :  { %13 = vst [vmem:[#allocation2] sm:$0x1] %v12_v0 }
   0x3   :  { %v29_v1 = vld [vmem:[%s1313_s0] sm:$0xff]  ;;  %v30_v2 = vld [vmem:[%s1313_s0 + $0x8] sm:$0xff]  ;;  %vm157_vm0 = vcmask 261120   ;;  %v31_v3 = vld [vmem:[%s1313_s0 + $0x10] sm:$0xff]  ;;  %v986_v7 = vmov 0  }
   0x4   :  { %v874_v4 = vpack.c.bf16 %v30_v2, %v29_v1  ;;  %vm1042_vm1 = vmpackc.low %vm157_vm0, %vm157_vm0  ;;  %v32_v6 = vld [vmem:[%s1313_s0 + $0x18] sm:$0xff]  ;;  %956 = vset.pattern.permute.xlu0 %v986_v7  ;;  %957 = vset.pattern.permute.xlu1 %v986_v7  ;;  %v45_v9 = vld [vmem:[%s1314_s1] sm:$0xff] }
   0x5   :  { %v880_v8 = vpack.c.bf16 %v32_v6, %v31_v3  ;;  %v33_v10 = vld [vmem:[%s1313_s0 + $0x20] sm:$0xff]  ;;  %v34_v11 = vld [vmem:[%s1313_s0 + $0x28] sm:$0xff]  ;;  %806 = vmatprep.mubr.msk.f32.mxu0 %vm157_vm0, %v45_v9  ;;  %v63_v15 = vld [vmem:[%s1315_s2 + $0x10] sm:$0xff] }
   0x6   :  { %876 = vmatprep.subr.msk.bf16.mxu0 %vm1042_vm1, %v874_v4  ;;  %v886_v12 = vpack.c.bf16 %v34_v11, %v33_v10  ;;  %v61_v13 = vld [vmem:[%s1315_s2] sm:$0xff]  ;;  %v62_v14 = vld [vmem:[%s1315_s2 + $0x8] sm:$0xff]  ;;  %89 = vperm.xlu1 %957, %v63_v15   ;;  %v64_v16 = vld [vmem:[%s1315_s2 + $0x18] sm:$0xff] }
   0x7   :  { %879 = vmatpush3.bf16.xpose.msk.msra.mxu0 %vm1042_vm1, %v874_v4  ;;  %79 = vperm.xlu0 %956, %v61_v13   ;;  %v35_v17 = vld [vmem:[%s1313_s0 + $0x30] sm:$0xff]  ;;  %v36_v18 = vld [vmem:[%s1313_s0 + $0x38] sm:$0xff]  ;;  %v65_v19 = vld [vmem:[%s1315_s2 + $0x20] sm:$0xff] }
   0x8   :  { %882 = vmatprep.subr.msk.bf16.mxu0 %vm1042_vm1, %v880_v8  ;;  %v892_v20 = vpack.c.bf16 %v36_v18, %v35_v17  ;;  %v66_v21 = vld [vmem:[%s1315_s2 + $0x28] sm:$0xff]  ;;  %v67_v22 = vld [vmem:[%s1315_s2 + $0x30] sm:$0xff]  ;;  %v68_v23 = vld [vmem:[%s1315_s2 + $0x38] sm:$0xff] }
   0x9   :  { %v37_v24 = vld [vmem:[%s1313_s0 + $0x40] sm:$0xff]  ;;  %v38_v25 = vld [vmem:[%s1313_s0 + $0x48] sm:$0xff] }
   0xa   :  { %94 = vperm.xlu1 %957, %v64_v16  }
   0xb   :  { %84 = vperm.xlu0 %956, %v62_v14  }
   0xe   :  { %104 = vperm.xlu1 %957, %v66_v21  }
   0xf   :  { %885 = vmatpush3.bf16.xpose.msk.msra.mxu0 %vm1042_vm1, %v880_v8  ;;  %99 = vperm.xlu0 %956, %v65_v19  }
  0x10   :  { %888 = vmatprep.subr.msk.bf16.mxu0 %vm1042_vm1, %v886_v12 }
  0x13   :  { %109 = vperm.xlu0 %956, %v67_v22  }
  0x17   :  { %891 = vmatpush3.bf16.xpose.msk.msra.mxu0 %vm1042_vm1, %v886_v12 }
  0x18   :  { %894 = vmatprep.subr.msk.bf16.mxu0 %vm1042_vm1, %v892_v20 }
  0x19   :  { %14 = vsyncpa [#allocation4], 0  ;;  %v69_v26 = vld [vmem:[%s1315_s2 + $0x40] sm:$0xff]  ;;  %114 = vperm.xlu1 %957, %v68_v23   ;;  %v898_v27 = vpack.c.bf16 %v38_v25, %v37_v24  ;;  %v70_v28 = vld [vmem:[%s1315_s2 + $0x48] sm:$0xff] }
  0x1a   :  { %119 = vperm.xlu0 %956, %v69_v26   ;;  %v71_v29 = vld [vmem:[%s1315_s2 + $0x50] sm:$0xff]  ;;  %v72_v30 = vld [vmem:[%s1315_s2 + $0x58] sm:$0xff]  ;;  %v73_v33 = vld [vmem:[%s1315_s2 + $0x60] sm:$0xff] }
  0x1b   :  { %v39_v31 = vld [vmem:[%s1313_s0 + $0x50] sm:$0xff]  ;;  %v40_v32 = vld [vmem:[%s1313_s0 + $0x58] sm:$0xff]  ;;  %v74_v35 = vld [vmem:[%s1315_s2 + $0x68] sm:$0xff] }
  0x1c   :  { %v904_v34 = vpack.c.bf16 %v40_v32, %v39_v31  ;;  %v75_v36 = vld [vmem:[%s1315_s2 + $0x70] sm:$0xff]  ;;  %v76_v37 = vld [vmem:[%s1315_s2 + $0x78] sm:$0xff]  ;;  %v41_v38 = vld [vmem:[%s1313_s0 + $0x60] sm:$0xff] }
  0x1d   :  { %124 = vperm.xlu1 %957, %v70_v28   ;;  %v42_v39 = vld [vmem:[%s1313_s0 + $0x68] sm:$0xff]  ;;  %v423_v40 = vld [vmem:[%s1317_s4] sm:$0xff]  ;;  %v425_v43 = vld [vmem:[%s1317_s4 + $0x10] sm:$0xff] }
  0x1e   :  { %129 = vperm.xlu0 %956, %v71_v29   ;;  %v910_v41 = vpack.c.bf16 %v42_v39, %v41_v38  ;;  %v424_v42 = vld [vmem:[%s1317_s4 + $0x8] sm:$0xff]  ;;  %v426_v44 = vld [vmem:[%s1317_s4 + $0x18] sm:$0xff]  ;;  %v43_v45 = vld [vmem:[%s1313_s0 + $0x70] sm:$0xff] }
  0x1f   :  { %897 = vmatpush3.bf16.xpose.msk.msra.mxu0 %vm1042_vm1, %v892_v20  ;;  %v44_v46 = vld [vmem:[%s1313_s0 + $0x78] sm:$0xff]  ;;  %v584_v47 = vld [vmem:[%s1318_s5] sm:$0xff]  ;;  %v585_v49 = vld [vmem:[%s1318_s5 + $0x8] sm:$0xff] }
  0x20   :  { %900 = vmatprep.subr.msk.bf16.mxu0 %vm1042_vm1, %v898_v27  ;;  %v916_v48 = vpack.c.bf16 %v44_v46, %v43_v45  ;;  %v427_v50 = vld [vmem:[%s1317_s4 + $0x20] sm:$0xff]  ;;  %v586_v51 = vld [vmem:[%s1318_s5 + $0x10] sm:$0xff]  ;;  %v428_v52 = vld [vmem:[%s1317_s4 + $0x28] sm:$0xff] }
  0x21   :  { %134 = vperm.xlu1 %957, %v72_v30   ;;  %v587_v53 = vld [vmem:[%s1318_s5 + $0x18] sm:$0xff]  ;;  %v429_v54 = vld [vmem:[%s1317_s4 + $0x30] sm:$0xff]  ;;  %v588_v55 = vld [vmem:[%s1318_s5 + $0x20] sm:$0xff] }
  0x22   :  { %139 = vperm.xlu0 %956, %v73_v33   ;;  %v430_v56 = vld [vmem:[%s1317_s4 + $0x38] sm:$0xff]  ;;  %v46_v57 = vld [vmem:[%s1314_s1 + $0x8] sm:$0xff]  ;;  %v47_v58 = vld [vmem:[%s1314_s1 + $0x10] sm:$0xff] }
  0x23   :  { %v589_v59 = vld [vmem:[%s1318_s5 + $0x28] sm:$0xff]  ;;  %v590_v60 = vld [vmem:[%s1318_s5 + $0x30] sm:$0xff]  ;;  %v48_v61 = vld [vmem:[%s1314_s1 + $0x18] sm:$0xff] }
  0x24   :  { %v49_v62 = vld [vmem:[%s1314_s1 + $0x20] sm:$0xff]  ;;  %v591_v63 = vld [vmem:[%s1318_s5 + $0x38] sm:$0xff]  ;;  %v50_v1 = vld [vmem:[%s1314_s1 + $0x28] sm:$0xff] }
  0x25   :  { %144 = vperm.xlu1 %957, %v74_v35   ;;  %v653_v0 = vld [vmem:[#allocation2] sm:$0x1]  ;;  %v51_v2 = vld [vmem:[%s1314_s1 + $0x30] sm:$0xff]  ;;  %v52_v3 = vld [vmem:[%s1314_s1 + $0x38] sm:$0xff] }
  0x26   :  { %149 = vperm.xlu0 %956, %v75_v36   ;;  %v53_v4 = vld [vmem:[%s1314_s1 + $0x40] sm:$0xff]  ;;  %v54_v5 = vld [vmem:[%s1314_s1 + $0x48] sm:$0xff]  ;;  %v55_v6 = vld [vmem:[%s1314_s1 + $0x50] sm:$0xff] }
  0x27   :  { %903 = vmatpush3.bf16.xpose.msk.msra.mxu0 %vm1042_vm1, %v898_v27  ;;  %v56_v7 = vld [vmem:[%s1314_s1 + $0x58] sm:$0xff]  ;;  %v57_v8 = vld [vmem:[%s1314_s1 + $0x60] sm:$0xff]  ;;  %v58_v9 = vld [vmem:[%s1314_s1 + $0x68] sm:$0xff] }
  0x28   :  { %906 = vmatprep.subr.msk.bf16.mxu0 %vm1042_vm1, %v904_v34  ;;  %v59_v10 = vld [vmem:[%s1314_s1 + $0x70] sm:$0xff]  ;;  %v60_v11 = vld [vmem:[%s1314_s1 + $0x78] sm:$0xff]  ;;  %v415_v12 = vld [vmem:[%s1316_s3] sm:$0xff] }
  0x29   :  { %154 = vperm.xlu1 %957, %v76_v37   ;;  %862 = vmatprep.mubr.f32.mxu1 %v415_v12 }
  0x2a   :  { %433 = vperm.xlu0 %956, %v423_v40  }
  0x2d   :  { %438 = vperm.xlu1 %957, %v424_v42  }
  0x2e   :  { %443 = vperm.xlu0 %956, %v425_v43  }
  0x2f   :  { %909 = vmatpush3.bf16.xpose.msk.msra.mxu0 %vm1042_vm1, %v904_v34 }
  0x30   :  { %912 = vmatprep.subr.msk.bf16.mxu0 %vm1042_vm1, %v910_v41 }
  0x31   :  { %448 = vperm.xlu1 %957, %v426_v44  }
  0x32   :  { %594 = vperm.xlu0 %956, %v584_v47  }
  0x35   :  { %599 = vperm.xlu1 %957, %v585_v49  }
  0x36   :  { %453 = vperm.xlu0 %956, %v427_v50  }
  0x37   :  { %915 = vmatpush3.bf16.xpose.msk.msra.mxu0 %vm1042_vm1, %v910_v41 }
  0x38   :  { %918 = vmatprep.subr.msk.bf16.mxu0 %vm1042_vm1, %v916_v48 }
  0x39   :  { %604 = vperm.xlu1 %957, %v586_v51  }
  0x3a   :  { %458 = vperm.xlu0 %956, %v428_v52  }
  0x3d   :  { %609 = vperm.xlu1 %957, %v587_v53  }
  0x3e   :  { %463 = vperm.xlu0 %956, %v429_v54  }
  0x3f   :  { %921 = vmatpush3.bf16.xpose.msk.msra.mxu0 %vm1042_vm1, %v916_v48 }
  0x41   :  { %614 = vperm.xlu1 %957, %v588_v55  }
  0x42   :  { %468 = vperm.xlu0 %956, %v430_v56  }
  0x45   :  { %619 = vperm.xlu1 %957, %v589_v59  }
  0x46   :  { %807 = vmatmul.mubr.msk.f32.vlgmr.msra.gmra.mrb[0].mxu0 %vm157_vm0, %v46_v57  ;;  %624 = vperm.xlu0 %956, %v590_v60  }
  0x47   :  { %809 = vmatprep.mubr.msk.f32.mxu0 %vm157_vm0, %v47_v58 }
  0x49   :  { %629 = vperm.xlu1 %957, %v591_v63  }
  0x4a   :  { %810 = vmatmul.mubr.msk.f32.gmra.mrb[2].mxu0 %vm157_vm0, %v48_v61  ;;  %656 = vperm.xlu0 %956, %v653_v0  }
  0x4b   :  { %812 = vmatprep.mubr.msk.f32.mxu0 %vm157_vm0, %v49_v62 }
  0x4e   :  { %813 = vmatmul.mubr.msk.f32.gmra.mrb[4].mxu0 %vm157_vm0, %v50_v1 }
  0x4f   :  { %815 = vmatprep.mubr.msk.f32.mxu0 %vm157_vm0, %v51_v2 }
  0x52   :  { %816 = vmatmul.mubr.msk.f32.gmra.mrb[6].mxu0 %vm157_vm0, %v52_v3 }
  0x53   :  { %818 = vmatprep.mubr.msk.f32.mxu0 %vm157_vm0, %v53_v4 }
  0x56   :  { %819 = vmatmul.mubr.msk.f32.gmra.mrb[8].mxu0 %vm157_vm0, %v54_v5 }
  0x57   :  { %821 = vmatprep.mubr.msk.f32.mxu0 %vm157_vm0, %v55_v6 }
  0x5a   :  { %822 = vmatmul.mubr.msk.f32.gmra.mrb[10].mxu0 %vm157_vm0, %v56_v7 }
  0x5b   :  { %824 = vmatprep.mubr.msk.f32.mxu0 %vm157_vm0, %v57_v8 }
  0x5e   :  { %825 = vmatmul.mubr.msk.f32.gmra.mrb[12].mxu0 %vm157_vm0, %v58_v9 }
  0x5f   :  { %827 = vmatprep.mubr.msk.f32.mxu0 %vm157_vm0, %v59_v10 }
  0x62   :  { %828 = vmatmul.mubr.msk.f32.gmra.mrb[14].mxu0 %vm157_vm0, %v60_v11 }
  0x85   :  { %v90_v13 = vpop.permute.xlu1 %89 }
  0x86   :  { %v80_v14 = vpop.permute.xlu0 %79 }
  0x89   :  { %v95_v15 = vpop.permute.xlu1 %94 }
  0x8a   :  { %v85_v16 = vpop.permute.xlu0 %84 }
  0x8d   :  { %v105_v17 = vpop.permute.xlu1 %104 }
  0x8e   :  { %v100_v18 = vpop.permute.xlu0 %99 }
  0x92   :  { %v110_v27 = vpop.permute.xlu0 %109 }
  0x98   :  { %v115_v24 = vpop.permute.xlu1 %114 }
  0x99   :  { %v120_v40 = vpop.permute.xlu0 %119 }
  0x9c   :  { %v125_v37 = vpop.permute.xlu1 %124 }
  0x9d   :  { %v130_v52 = vpop.permute.xlu0 %129 }
  0xa0   :  { %v135_v49 = vpop.permute.xlu1 %134 }
  0xa1   :  { %v140_v1 = vpop.permute.xlu0 %139 }
  0xa4   :  { %v145_v62 = vpop.permute.xlu1 %144 }
  0xa8   :  { %v155_v10 = vpop.permute.xlu1 %154 }
 0x119   :  { %v808_v19 = vpop.f32.mrb[0].mxu0 }
 0x11a   :  { %v326_v20 = vadd.f32 %v808_v19, %v85_v16  ;;  %v320_v21 = vpop.f32.mrb[1].mxu0 }
 0x11b   :  { %v321_v22 = vadd.f32 %v320_v21, %v80_v14  ;;  %v416_v21 = vld [vmem:[%s1316_s3 + $0x8] sm:$0xff] }
 0x11c   :  { %v400_v23 = vmax.f32 %v326_v20, 0.0 }
 0x11d   :  { %v399_v25 = vmax.f32 %v321_v22, 0.0  ;;  %v811_v26 = vpop.f32.mrb[2].mxu0  ;;  %v417_v22 = vld [vmem:[%s1316_s3 + $0x10] sm:$0xff] }
 0x11e   :  { %v336_v28 = vadd.f32 %v811_v26, %v95_v15  ;;  %v330_v29 = vpop.f32.mrb[3].mxu0  ;;  %v421_v26 = vld [vmem:[%s1316_s3 + $0x30] sm:$0xff] }
 0x11f   :  { %v331_v30 = vadd.f32 %v330_v29, %v90_v13  ;;  %v922_v31 = vpack.c.bf16 %v400_v23, %v399_v25  ;;  %v150_v13 = vpop.permute.xlu0 %149  ;;  %v418_v23 = vld [vmem:[%s1316_s3 + $0x18] sm:$0xff]  ;;  %v420_v25 = vld [vmem:[%s1316_s3 + $0x28] sm:$0xff]  ;;  %v439_v29 = vpop.permute.xlu1 %438 }
 0x120   :  { %v402_v32 = vmax.f32 %v336_v28, 0.0 }
 0x121   :  { %v401_v33 = vmax.f32 %v331_v30, 0.0  ;;  %v814_v34 = vpop.f32.mrb[4].mxu0  ;;  %923 = vmatprep.subr.bf16.mxu1 %v922_v31 }
 0x122   :  { %v346_v35 = vadd.f32 %v814_v34, %v105_v17  ;;  %v340_v36 = vpop.f32.mrb[5].mxu0  ;;  %925 = vmatpush3.bf16.msra.mxu1 %v922_v31 }
 0x123   :  { %v926_v38 = vpack.c.bf16 %v402_v32, %v401_v33  ;;  %v341_v39 = vadd.f32 %v340_v36, %v100_v18  ;;  %v434_v28 = vpop.permute.xlu0 %433  ;;  %v449_v31 = vpop.permute.xlu1 %448 }
 0x124   :  { %v404_v41 = vmax.f32 %v346_v35, 0.0 }
 0x125   :  { %v403_v42 = vmax.f32 %v341_v39, 0.0  ;;  %v817_v43 = vpop.f32.mrb[6].mxu0  ;;  %927 = vmatprep.subr.bf16.mxu1 %v926_v38 }
 0x126   :  { %v356_v44 = vadd.f32 %v817_v43, %v115_v24  ;;  %v350_v45 = vpop.f32.mrb[7].mxu0  ;;  %929 = vmatpush3.bf16.msra.mxu1 %v926_v38  ;;  %v419_v24 = vld [vmem:[%s1316_s3 + $0x20] sm:$0xff] }
 0x127   :  { %v930_v46 = vpack.c.bf16 %v404_v41, %v403_v42  ;;  %v351_v47 = vadd.f32 %v350_v45, %v110_v27  ;;  %v422_v27 = vld [vmem:[%s1316_s3 + $0x38] sm:$0xff]  ;;  %v444_v30 = vpop.permute.xlu0 %443  ;;  %v600_v33 = vpop.permute.xlu1 %599  ;;  %s987_s3 = smov [#allocation3]  }
 0x128   :  { %v406_v48 = vmax.f32 %v356_v44, 0.0  ;;  %s677_s15 = sshll.u32 %s987_s3, 4  ;;  %s678_s15 = int_to_ptr.vmem [resolvable:$true] %s677_s15 }
 0x129   :  { %v405_v50 = vmax.f32 %v351_v47, 0.0  ;;  %v820_v51 = vpop.f32.mrb[8].mxu0  ;;  %931 = vmatprep.subr.bf16.mxu1 %v930_v46  ;;  %s962_s16 = scalar_lea.vmem %s678_s15, 16  ;;  %s966_s17 = scalar_lea.vmem %s678_s15, 32 }
 0x12a   :  { %v366_v53 = vadd.f32 %v820_v51, %v125_v37  ;;  %v360_v54 = vpop.f32.mrb[9].mxu0  ;;  %933 = vmatpush3.bf16.msra.mxu1 %v930_v46  ;;  %p963_p0 = scmp.ne.s32.totalorder %s678_s15, %s962_s16  ;;  %p967_p1 = scmp.lt.s32.totalorder %s678_s15, %s678_s15 }
 0x12b   :  { %v934_v55 = vpack.c.bf16 %v406_v48, %v405_v50  ;;  %v361_v56 = vadd.f32 %v360_v54, %v120_v40  ;;  %v595_v32 = vpop.permute.xlu0 %594  ;;  %v605_v35 = vpop.permute.xlu1 %604  ;;  %p968_p2 = scmp.lt.s32.totalorder %s966_s17, %s962_s16 }
 0x12c   :  { %v408_v57 = vmax.f32 %v366_v53, 0.0 }
 0x12d   :  { %v407_v58 = vmax.f32 %v361_v56, 0.0  ;;  %v823_v59 = vpop.f32.mrb[10].mxu0  ;;  %935 = vmatprep.subr.bf16.mxu1 %v934_v55  ;;  %p969_p3 = por %p968_p2, %p967_p1 }
 0x12e   :  { %v376_v60 = vadd.f32 %v823_v59, %v135_v49  ;;  %v370_v61 = vpop.f32.mrb[11].mxu0  ;;  %937 = vmatpush3.bf16.msra.mxu1 %v934_v55 }
 0x12f   :  { %v938_v63 = vpack.c.bf16 %v408_v57, %v407_v58  ;;  %v371_v0 = vadd.f32 %v370_v61, %v130_v52  ;;  %v454_v34 = vpop.permute.xlu0 %453  ;;  %v610_v38 = vpop.permute.xlu1 %609  ;;  %p970_p4 = pnand %p969_p3, %p963_p0 }
 0x130   :  { %v410_v2 = vmax.f32 %v376_v60, 0.0 }
 0x131   :  { %v409_v3 = vmax.f32 %v371_v0, 0.0  ;;  %v826_v4 = vpop.f32.mrb[12].mxu0  ;;  %939 = vmatprep.subr.bf16.mxu1 %v938_v63 }
 0x132   :  { %v386_v5 = vadd.f32 %v826_v4, %v145_v62  ;;  %v380_v6 = vpop.f32.mrb[13].mxu0  ;;  %941 = vmatpush3.bf16.msra.mxu1 %v938_v63 }
 0x133   :  { %v942_v7 = vpack.c.bf16 %v410_v2, %v409_v3  ;;  %v381_v8 = vadd.f32 %v380_v6, %v140_v1  ;;  %v459_v36 = vpop.permute.xlu0 %458  ;;  %v615_v51 = vpop.permute.xlu1 %614 }
 0x134   :  { %v412_v9 = vmax.f32 %v386_v5, 0.0 }
 0x135   :  { %v411_v11 = vmax.f32 %v381_v8, 0.0  ;;  %v829_v12 = vpop.f32.mrb[14].mxu0  ;;  %943 = vmatprep.subr.bf16.mxu1 %v942_v7 }
 0x136   :  { %v396_v14 = vadd.f32 %v829_v12, %v155_v10  ;;  %v390_v15 = vpop.f32.mrb[15].mxu0  ;;  %945 = vmatpush3.bf16.msra.mxu1 %v942_v7 }
 0x137   :  { %v946_v16 = vpack.c.bf16 %v412_v9, %v411_v11  ;;  %v391_v17 = vadd.f32 %v390_v15, %v150_v13  ;;  %v464_v45 = vpop.permute.xlu0 %463  ;;  %v620_v2 = vpop.permute.xlu1 %619 }
 0x138   :  { %v414_v18 = vmax.f32 %v396_v14, 0.0 }
 0x139   :  { %v413_v19 = vmax.f32 %v391_v17, 0.0  ;;  %947 = vmatprep.subr.bf16.mxu1 %v946_v16 }
 0x13a   :  { %949 = vmatpush3.bf16.msra.mxu1 %v946_v16 }
 0x13b   :  { %v950_v20 = vpack.c.bf16 %v414_v18, %v413_v19  ;;  %v469_v60 = vpop.permute.xlu0 %468  ;;  %v630_v15 = vpop.permute.xlu1 %629  ;;  %v659_v18 = vlaneseq }
 0x13d   :  { %951 = vmatprep.subr.bf16.mxu1 %v950_v20 }
 0x13e   :  { %953 = vmatpush3.bf16.msra.mxu1 %v950_v20 }
 0x13f   :  { %v625_v12 = vpop.permute.xlu0 %624 }
 0x141   :  { %863 = vmatmul.mubr.f32.vlgmr.msra.gmra.mrb[0].mxu1 %v416_v21  ;;  %v660_v21 = vshrl.u32 %v659_v18, 7 }
 0x142   :  { %865 = vmatprep.mubr.f32.mxu1 %v417_v22 }
 0x145   :  { %866 = vmatmul.mubr.f32.gmra.mrb[2].mxu1 %v418_v23 }
 0x146   :  { %868 = vmatprep.mubr.f32.mxu1 %v419_v24  ;;  %v661_v24 = vsub.s32 0, %v660_v21 }
 0x149   :  { %869 = vmatmul.mubr.f32.gmra.mrb[4].mxu1 %v420_v25 }
 0x14a   :  { %871 = vmatprep.mubr.f32.mxu1 %v421_v26  ;;  %v657_v26 = vpop.permute.xlu0 %656 }
 0x14d   :  { %872 = vmatmul.mubr.f32.gmra.mrb[6].mxu1 %v422_v27 }
 0x214   :  { %v864_v37 = vpop.f32.mrb[0].mxu1 }
 0x215   :  { %v543_v39 = vadd.f32 %v864_v37, %v439_v29  ;;  %v537_v40 = vpop.f32.mrb[1].mxu1 }
 0x216   :  { %v538_v41 = vadd.f32 %v537_v40, %v434_v28  ;;  %v662_v28 = vrot.slane %v657_v26, %v661_v24 }
 0x217   :  { %v577_v42 = vmax.f32 %v543_v39, 0.0 }
 0x218   :  { %v576_v43 = vmax.f32 %v538_v41, 0.0  ;;  %v867_v44 = vpop.f32.mrb[2].mxu1 }
 0x219   :  { %v633_v46 = vmul.f32 %v600_v33, %v577_v42  ;;  %v553_v47 = vadd.f32 %v867_v44, %v449_v31  ;;  %v547_v48 = vpop.f32.mrb[3].mxu1 }
 0x21a   :  { %v632_v49 = vmul.f32 %v595_v32, %v576_v43  ;;  %v548_v50 = vadd.f32 %v547_v48, %v444_v30 }
 0x21b   :  { %v579_v53 = vmax.f32 %v553_v47, 0.0 }
 0x21c   :  { %v640_v52 = vadd.f32 %v633_v46, %v632_v49  ;;  %v578_v54 = vmax.f32 %v548_v50, 0.0  ;;  %v870_v55 = vpop.f32.mrb[4].mxu1 }
 0x21d   :  { %v563_v56 = vadd.f32 %v870_v55, %v459_v36  ;;  %v557_v57 = vpop.f32.mrb[5].mxu1  ;;  %v635_v61 = vmul.f32 %v610_v38, %v579_v53 }
 0x21e   :  { %v634_v58 = vmul.f32 %v605_v35, %v578_v54  ;;  %v558_v59 = vadd.f32 %v557_v57, %v454_v34 }
 0x21f   :  { %v581_v63 = vmax.f32 %v563_v56, 0.0 }
 0x220   :  { %v641_v62 = vadd.f32 %v640_v52, %v634_v58  ;;  %v580_v0 = vmax.f32 %v558_v59, 0.0  ;;  %v873_v1 = vpop.f32.mrb[6].mxu1 }
 0x221   :  { %v573_v3 = vadd.f32 %v873_v1, %v469_v60  ;;  %v567_v4 = vpop.f32.mrb[7].mxu1  ;;  %v637_v8 = vmul.f32 %v620_v2, %v581_v63 }
 0x222   :  { %v636_v5 = vmul.f32 %v615_v51, %v580_v0  ;;  %v642_v6 = vadd.f32 %v641_v62, %v635_v61  ;;  %v568_v7 = vadd.f32 %v567_v4, %v464_v45 }
 0x223   :  { %v583_v10 = vmax.f32 %v573_v3, 0.0 }
 0x224   :  { %v643_v9 = vadd.f32 %v642_v6, %v636_v5  ;;  %v582_v11 = vmax.f32 %v568_v7, 0.0 }
 0x225   :  { %v639_v16 = vmul.f32 %v630_v15, %v583_v10 }
 0x226   :  { %v638_v13 = vmul.f32 %v625_v12, %v582_v11  ;;  %v644_v14 = vadd.f32 %v643_v9, %v637_v8 }
 0x228   :  { %v645_v17 = vadd.f32 %v644_v14, %v638_v13 }
 0x22a   :  { %v646_v19 = vadd.f32 %v645_v17, %v639_v16 }
 0x22c   :  { %v647_v20 = vrot.slane %v646_v19, 4 }
 0x22e   :  { %v648_v22 = vadd.f32 %v647_v20, %v646_v19 }
 0x230   :  { %v649_v23 = vrot.slane %v648_v22, 2 }
 0x232   :  { %v650_v25 = vadd.f32 %v649_v23, %v648_v22 }
 0x234   :  { %v651_v27 = vrot.slane %v650_v25, 1 }
 0x236   :  { %v652_v29 = vadd.f32 %v651_v27, %v650_v25 }
 0x238   :  { %v663_v30 = vadd.f32 %v662_v28, %v652_v29 }
 0x23a   :  { %v717_v31 = vmul.f32 -1.442695, %v663_v30 }
 0x23c   :  { %958 = vpow2.f32 %v717_v31 }
 0x246   :  { %v959_v32 = vpop.eup %958 }
 0x247   :  { %v667_v33 = vadd.f32 1.0, %v959_v32 }
 0x249   :  { %960 = vrcp.f32 %v667_v33 }
 0x253   :  { %v961_v34 = vpop.eup %960 }
 0x254   :  { %670 = vst [vmem:[#allocation3] sm:$0x1] %v961_v34 }
 0x255   :  { %973 = shalt.err (!%p970_p4)
}
 0x256   :  { %s974_s2 = scalar_lea.hbm %s1320_s7, 16 }
 0x257   :  { %p975_p5 = scmp.ne.s32.totalorder %s1320_s7, %s974_s2  ;;  %p978_p6 = scmp.lt.u32.totalorder %s974_s2, %s1320_s7 }
 0x259   :  { %p980_p7 = pnand %p978_p6, %p975_p5 }
 0x25b   :  { %983 = shalt.err (!%p980_p7)
}
 0x25c   :  { %680 = dma.vmem_to_hbm [thread:$0]  %s678_s15, 16, %s1320_s7, [#allocation4]  }
 0x25d   :  { %984 = dma.done.wait [#allocation4], 16  }
 0x25e   :  { %985 = vsyncadd [#allocation4], 4294967280 }
 0x25f   :  { %684 = vsyncpa [#allocation4], 1 }

</bundles_post_ra>
